<compile_context>
chip_gen: v7x
topology: tpu7x:2x2x1
jax: 0.10.0
libtpu: 0.0.40
codegen_flags: <defaults>
</compile_context>

<pallas_src>
import jax
import jax.numpy as jnp
from jax import lax
from jax.experimental import pallas as pl
from jax.experimental.pallas import tpu as pltpu

GROUPS = 32
EPS = 1e-6
LPAD = 8  # left column offset of the data inside the padded VMEM scratch (aligned stores)


def _pick_row_tile(h):
    for th in (16, 8):
        if h % th == 0 and h > th:
            return th
    return h


# ---------------------------------------------------------------------------
# Tiled per-channel moment sums (sum, sum of squares) -> used for GroupNorm stats.
# ---------------------------------------------------------------------------
def _stats_kernel(x_ref, o_ref):
    C = x_ref.shape[3]
    x = x_ref[0].astype(jnp.float32).reshape(-1, C)          # (TH*W, C)
    o_ref[:, :, 0:1, :] = jnp.sum(x, axis=0, keepdims=True).reshape(1, 1, 1, C)
    o_ref[:, :, 1:2, :] = jnp.sum(x * x, axis=0, keepdims=True).reshape(1, 1, 1, C)


def channel_sums(x, row_tile):
    N, H, W, C = x.shape
    assert H % row_tile == 0
    HT = H // row_tile
    return pl.pallas_call(
        _stats_kernel,
        out_shape=jax.ShapeDtypeStruct((N, HT, 2, C), jnp.float32),
        grid=(N, HT),
        in_specs=[pl.BlockSpec((1, row_tile, W, C), lambda n, i: (n, i, 0, 0))],
        out_specs=pl.BlockSpec((1, 1, 2, C), lambda n, i: (n, i, 0, 0)),
        compiler_params=pltpu.CompilerParams(
            dimension_semantics=("parallel", "parallel")),
    )(x)


def _finalize_gn(stats, gamma, beta, hw):
    """(N, HT, 2, C) partial channel sums -> per-batch per-channel (scale, shift)."""
    s = jnp.sum(stats.astype(jnp.float32), axis=1)            # (N, 2, C)
    N, _, C = s.shape
    cpg = C // GROUPS
    sg = s.reshape(N, 2, GROUPS, cpg).sum(axis=-1)            # (N, 2, G)
    cnt = float(hw * cpg)
    mean = sg[:, 0] / cnt
    # single-pass variance in fp32 (clamped); two-pass is safer for huge magnitudes.
    var = jnp.maximum(sg[:, 1] / cnt - mean * mean, 0.0)
    rstd = lax.rsqrt(var + EPS)
    mean_c = jnp.repeat(mean, cpg, axis=1)                    # (N, C)
    rstd_c = jnp.repeat(rstd, cpg, axis=1)
    scale = rstd_c * gamma.astype(jnp.float32)[None, :]
    shift = beta.astype(jnp.float32)[None, :] - mean_c * scale
    return scale, shift


# ---------------------------------------------------------------------------
# Fused GroupNorm (precomputed scale/shift) + swish + 3x3 conv (+ per-batch bias)
# + optional residual shortcut epilogue (identity add or 1x1 nin conv + add).
# Optionally emits partial moments of its own output for the next GroupNorm.
# ---------------------------------------------------------------------------
def _make_fused_conv_kernel(*, apply_swish, shortcut, emit_stats, cdtype, lpad):
    def kernel(cen_ref, top_ref, bot_ref, scale_ref, shift_ref, bias_ref, w_ref, *rest):
        rest = list(rest)
        sc_ref = rest.pop(0) if shortcut is not None else None
        nin_ref = rest.pop(0) if shortcut == "nin" else None
        o_ref = rest.pop(0)
        stats_ref = rest.pop(0) if emit_stats else None
        pad_ref = rest.pop(0)

        TH, W, Cin = cen_ref.shape[1], cen_ref.shape[2], cen_ref.shape[3]
        Cout = o_ref.shape[3]
        i = pl.program_id(1)
        nrows = pl.num_programs(1)

        scale = scale_ref[0]                                  # (1, Cin) fp32
        shift = shift_ref[0]

        def norm(v):                                          # v: (R, W, Cin) raw rows
            y = v.astype(jnp.float32) * scale + shift
            if apply_swish:
                y = y * (1.0 / (1.0 + jnp.exp(-y)))
            return y.astype(cdtype)

        # ---- assemble the normalized, zero-padded tile in VMEM scratch ----
        pad_ref[1:TH + 1, lpad:lpad + W, :] = norm(cen_ref[0])

        zrow = jnp.zeros((1, W, Cin), cdtype)

        @pl.when(i > 0)
        def _():
            pad_ref[0:1, lpad:lpad + W, :] = norm(top_ref[0])

        @pl.when(i == 0)
        def _():
            pad_ref[0:1, lpad:lpad + W, :] = zrow

        @pl.when(i < nrows - 1)
        def _():
            pad_ref[TH + 1:TH + 2, lpad:lpad + W, :] = norm(bot_ref[0])

        @pl.when(i == nrows - 1)
        def _():
            pad_ref[TH + 1:TH + 2, lpad:lpad + W, :] = zrow

        zcol = jnp.zeros((TH + 2, 1, Cin), cdtype)
        pad_ref[:, lpad - 1:lpad, :] = zcol
        pad_ref[:, lpad + W:lpad + W + 1, :] = zcol

        # ---- 3x3 conv: 3 column-shifted loads (hoisted), 9 MXU matmuls, fp32 acc ----
        acc = jnp.zeros((TH * W, Cout), jnp.float32)
        for dw in range(3):
            xs = pad_ref[:, lpad - 1 + dw:lpad - 1 + dw + W, :]     # (TH+2, W, Cin)
            for dh in range(3):
                patch = xs[dh:dh + TH].reshape(TH * W, Cin)
                acc = acc + jnp.dot(patch, w_ref[dh, dw],
                                    preferred_element_type=jnp.float32)

        acc = acc + bias_ref[0]                               # conv bias (+ temb / nin bias)

        # ---- fused residual shortcut epilogue ----
        if shortcut == "identity":
            acc = acc + sc_ref[0].reshape(TH * W, Cout).astype(jnp.float32)
        elif shortcut == "nin":
            s = sc_ref[0].reshape(TH * W, sc_ref.shape[3]).astype(cdtype)
            acc = acc + jnp.dot(s, nin_ref[...], preferred_element_type=jnp.float32)

        o_ref[...] = acc.reshape(1, TH, W, Cout).astype(o_ref.dtype)

        if emit_stats:
            # partial per-channel moments of this tile's output (for the next GroupNorm)
            stats_ref[:, :, 0:1, :] = jnp.sum(acc, axis=0, keepdims=True
                                              ).reshape(1, 1, 1, Cout)
            stats_ref[:, :, 1:2, :] = jnp.sum(acc * acc, axis=0, keepdims=True
                                              ).reshape(1, 1, 1, Cout)

    return kernel


def gn_swish_conv(x, scale, shift, w, bias, *, sc=None, nin_w=None, apply_swish=True,
                  emit_stats=False, row_tile=None, compute_dtype=None, out_dtype=None):
    N, H, W, Cin = x.shape
    Cout = w.shape[-1]
    TH = row_tile or _pick_row_tile(H)
    assert H % TH == 0
    HT = H // TH
    cdtype = jnp.dtype(compute_dtype) if compute_dtype is not None else w.dtype
    odtype = out_dtype or x.dtype
    shortcut = None if sc is None else ("nin" if nin_w is not None else "identity")

    kernel = _make_fused_conv_kernel(apply_swish=apply_swish, shortcut=shortcut,
                                     emit_stats=emit_stats, cdtype=cdtype, lpad=LPAD)

    in_specs = [
        pl.BlockSpec((1, TH, W, Cin), lambda n, i: (n, i, 0, 0)),                 # center rows
        pl.BlockSpec((1, 1, W, Cin),                                              # top halo row
                     lambda n, i: (n, jnp.maximum(i * TH - 1, 0), 0, 0)),
        pl.BlockSpec((1, 1, W, Cin),                                              # bottom halo row
                     lambda n, i: (n, jnp.minimum(i * TH + TH, H - 1), 0, 0)),
        pl.BlockSpec((1, 1, Cin), lambda n, i: (n, 0, 0)),                        # GN scale
        pl.BlockSpec((1, 1, Cin), lambda n, i: (n, 0, 0)),                        # GN shift
        pl.BlockSpec((1, 1, Cout), lambda n, i: (n, 0, 0)),                       # per-batch bias
        pl.BlockSpec((3, 3, Cin, Cout), lambda n, i: (0, 0, 0, 0)),               # conv weight
    ]
    args = [x, x, x,
            scale.reshape(N, 1, Cin).astype(jnp.float32),
            shift.reshape(N, 1, Cin).astype(jnp.float32),
            bias.reshape(N, 1, Cout).astype(jnp.float32),
            w.astype(cdtype)]

    if shortcut is not None:
        Csc = sc.shape[-1]
        in_specs.append(pl.BlockSpec((1, TH, W, Csc), lambda n, i: (n, i, 0, 0)))
        args.append(sc)
    if shortcut == "nin":
        in_specs.append(pl.BlockSpec(nin_w.shape, lambda n, i: (0, 0)))
        args.append(nin_w.astype(cdtype))

    out_shape = [jax.ShapeDtypeStruct((N, H, W, Cout), odtype)]
    out_specs = [pl.BlockSpec((1, TH, W, Cout), lambda n, i: (n, i, 0, 0))]
    if emit_stats:
        out_shape.append(jax.ShapeDtypeStruct((N, HT, 2, Cout), jnp.float32))
        out_specs.append(pl.BlockSpec((1, 1, 2, Cout), lambda n, i: (n, i, 0, 0)))

    out = pl.pallas_call(
        kernel,
        grid=(N, HT),
        in_specs=in_specs,
        out_specs=out_specs,
        out_shape=out_shape,
        scratch_shapes=[pltpu.VMEM((TH + 2, W + LPAD + 1, Cin), cdtype)],
        compiler_params=pltpu.CompilerParams(
            dimension_semantics=("parallel", "parallel")),
    )(*args)
    return (out[0], out[1]) if emit_stats else out[0]


# ---------------------------------------------------------------------------
# ResnetBlock forward
# ---------------------------------------------------------------------------
def resnet_block_forward(params, x_nchw, temb, *, use_conv_shortcut=False,
                         compute_dtype=None, row_tile=None):
    N, Cin, H, W = x_nchw.shape
    Cout = params["conv1_w"].shape[-1]
    x = jnp.transpose(x_nchw, (0, 2, 3, 1))                   # NCHW -> NHWC
    TH = row_tile or _pick_row_tile(H)
    cdtype = jnp.dtype(compute_dtype) if compute_dtype is not None else params["conv1_w"].dtype

    # GroupNorm1 statistics (tiled partial sums, finalized in plain jnp: O(N*C))
    st1 = channel_sums(x, TH)
    scale1, shift1 = _finalize_gn(st1, params["norm1_g"], params["norm1_b"], H * W)

    # temb_proj(swish(temb)) is tiny -> plain jnp, folded into conv1's per-batch bias
    bias1 = jnp.broadcast_to(params["conv1_b"].astype(jnp.float32)[None, :], (N, Cout))
    if temb is not None:
        t = temb.astype(jnp.float32)
        t = t * jax.nn.sigmoid(t)
        bias1 = bias1 + jnp.dot(t, params["temb_w"].astype(jnp.float32),
                                precision=lax.Precision.HIGHEST) \
                      + params["temb_b"].astype(jnp.float32)[None, :]

    # GN1 + swish + conv1 (+ temb), also emits GN2 partial moments of its output
    h1, st2 = gn_swish_conv(x, scale1, shift1, params["conv1_w"], bias1,
                            emit_stats=True, row_tile=TH, compute_dtype=cdtype)
    scale2, shift2 = _finalize_gn(st2, params["norm2_g"], params["norm2_b"], H * W)

    # TODO(synk): nn.Dropout is identity in eval mode; training-mode random dropout not implemented.

    # GN2 + swish + conv2, residual shortcut fused into the conv2 epilogue
    bias2 = jnp.broadcast_to(params["conv2_b"].astype(jnp.float32)[None, :], (N, Cout))
    if Cin != Cout:
        if use_conv_shortcut:
            sc = gn_swish_conv(x, jnp.ones((N, Cin), jnp.float32),
                               jnp.zeros((N, Cin), jnp.float32),
                               params["convsc_w"],
                               jnp.broadcast_to(params["convsc_b"].astype(jnp.float32)[None, :],
                                                (N, Cout)),
                               apply_swish=False, row_tile=TH, compute_dtype=cdtype)
            out = gn_swish_conv(h1, scale2, shift2, params["conv2_w"], bias2,
                                sc=sc, row_tile=TH, compute_dtype=cdtype)
        else:
            bias2 = bias2 + params["nin_b"].astype(jnp.float32)[None, :]
            out = gn_swish_conv(h1, scale2, shift2, params["conv2_w"], bias2,
                                sc=x, nin_w=params["nin_w"],
                                row_tile=TH, compute_dtype=cdtype)
    else:
        out = gn_swish_conv(h1, scale2, shift2, params["conv2_w"], bias2,
                            sc=x, row_tile=TH, compute_dtype=cdtype)

    return jnp.transpose(out, (0, 3, 1, 2))                   # NHWC -> NCHW


# ---------------------------------------------------------------------------
# Reference (plain JAX) and parameter init for testing
# ---------------------------------------------------------------------------
def _ref_groupnorm(v, gamma, beta):
    N, H, W, C = v.shape
    vg = v.reshape(N, H, W, GROUPS, C // GROUPS)
    mean = vg.mean(axis=(1, 2, 4), keepdims=True)
    var = ((vg - mean) ** 2).mean(axis=(1, 2, 4), keepdims=True)
    vn = ((vg - mean) * lax.rsqrt(var + EPS)).reshape(N, H, W, C)
    return vn * gamma + beta


def _reference_forward(params, x_nchw, temb, use_conv_shortcut=False):
    x = jnp.transpose(x_nchw, (0, 2, 3, 1)).astype(jnp.float32)
    swish = lambda v: v * jax.nn.sigmoid(v)
    conv = lambda v, w, b: lax.conv_general_dilated(
        v, w.astype(jnp.float32), (1, 1), "SAME",
        dimension_numbers=("NHWC", "HWIO", "NHWC"),
        precision=lax.Precision.HIGHEST) + b
    h = conv(swish(_ref_groupnorm(x, params["norm1_g"], params["norm1_b"])),
             params["conv1_w"], params["conv1_b"])
    if temb is not None:
        t = swish(temb.astype(jnp.float32))
        h = h + (jnp.dot(t, params["temb_w"], precision=lax.Precision.HIGHEST)
                 + params["temb_b"])[:, None, None, :]
    h = conv(swish(_ref_groupnorm(h, params["norm2_g"], params["norm2_b"])),
             params["conv2_w"], params["conv2_b"])
    cin, cout = x.shape[-1], h.shape[-1]
    if cin != cout:
        if use_conv_shortcut:
            xs = conv(x, params["convsc_w"], params["convsc_b"])
        else:
            xs = jnp.dot(x, params["nin_w"], precision=lax.Precision.HIGHEST) + params["nin_b"]
    else:
        xs = x
    return jnp.transpose(xs + h, (0, 3, 1, 2))


def init_params(key, cin, cout, temb_ch, dtype=jnp.float32):
    ks = jax.random.split(key, 12)
    s = 0.05
    return dict(
        norm1_g=(1.0 + 0.1 * jax.random.normal(ks[0], (cin,))).astype(dtype),
        norm1_b=(0.1 * jax.random.normal(ks[1], (cin,))).astype(dtype),
        conv1_w=(s * jax.random.normal(ks[2], (3, 3, cin, cout))).astype(dtype),
        conv1_b=(s * jax.random.normal(ks[3], (cout,))).astype(dtype),
        temb_w=(s * jax.random.normal(ks[4], (temb_ch, cout))).astype(dtype),
        temb_b=(s * jax.random.normal(ks[5], (cout,))).astype(dtype),
        norm2_g=(1.0 + 0.1 * jax.random.normal(ks[6], (cout,))).astype(dtype),
        norm2_b=(0.1 * jax.random.normal(ks[7], (cout,))).astype(dtype),
        conv2_w=(s * jax.random.normal(ks[8], (3, 3, cout, cout))).astype(dtype),
        conv2_b=jnp.zeros((cout,), dtype),
        nin_w=(s * jax.random.normal(ks[9], (cin, cout))).astype(dtype),
        nin_b=jnp.zeros((cout,), dtype),
        convsc_w=(s * jax.random.normal(ks[10], (3, 3, cin, cout))).astype(dtype),
        convsc_b=(s * jax.random.normal(ks[11], (cout,))).astype(dtype),
    )


if __name__ == "__main__":
    key = jax.random.PRNGKey(0)
    kx, kt, kp = jax.random.split(key, 3)

    # Config 1: in_channels != out_channels -> fused 1x1 nin_shortcut path (+ temb)
    N, Cin, H, W = 2, 32, 16, 16          # GroupNorm(32) requires channels % 32 == 0
    Cout, Tc = 64, 64
    x = jax.random.normal(kx, (N, Cin, H, W), jnp.float32)
    temb = jax.random.normal(kt, (N, Tc), jnp.float32)
    params = init_params(kp, Cin, Cout, Tc)
    ref = _reference_forward(params, x, temb)

    out32 = jax.block_until_ready(
        resnet_block_forward(params, x, temb, compute_dtype=jnp.float32))
    assert out32.shape == (N, Cout, H, W), out32.shape
    err32 = float(jnp.max(jnp.abs(out32 - ref)))
    assert err32 < 2e-2, f"fp32 path mismatch vs reference: {err32}"

    # Same config with bf16 MXU operands (fp32 accumulation)
    out_bf = jax.block_until_ready(
        resnet_block_forward(params, x, temb, compute_dtype=jnp.bfloat16))
    assert bool(jnp.all(jnp.isfinite(out_bf)))
    err_bf = float(jnp.max(jnp.abs(out_bf - ref)))
    assert err_bf < 0.25, f"bf16 path mismatch vs reference: {err_bf}"

    # Config 2: in_channels == out_channels -> identity shortcut fused into conv2, no temb
    k2x, k2p = jax.random.split(jax.random.PRNGKey(1))
    x2 = jax.random.normal(k2x, (2, 64, 16, 16), jnp.float32)
    params2 = init_params(k2p, 64, 64, Tc)
    ref2 = _reference_forward(params2, x2, None)
    out2 = jax.block_until_ready(
        resnet_block_forward(params2, x2, None, compute_dtype=jnp.float32))
    err2 = float(jnp.max(jnp.abs(out2 - ref2)))
    assert err2 < 2e-2, f"identity-shortcut path mismatch vs reference: {err2}"

    print("KERNEL_OK")
</pallas_src>

<mosaic_0001>
module attributes {stable_mosaic.version = 11 : i64} {
  func.func @_stats_kernel(%arg0: i32, %arg1: i32, %arg2: memref<1x8x16x32xf32, #tpu.memory_space<vmem>>, %arg3: memref<1x1x2x32xf32, #tpu.memory_space<vmem>>) attributes {dimension_semantics = [#tpu.dimension_semantics<parallel>, #tpu.dimension_semantics<parallel>], iteration_bounds = array<i64: 2, 2>, scalar_prefetch = 0 : i64, scratch_operands = 0 : i64, tpu.core_type = #tpu.core_type<tc>, window_params = [{transform_indices = @transform_0, window_bounds = array<i64: 1, 8, 16, 32>}, {transform_indices = @transform_1, window_bounds = array<i64: 1, 1, 2, 32>}]} {
    %c0 = arith.constant 0 : index
    %c0_0 = arith.constant 0 : index
    %c0_1 = arith.constant 0 : index
    %c0_2 = arith.constant 0 : index
    %0 = vector.load %arg2[%c0, %c0_0, %c0_1, %c0_2] : memref<1x8x16x32xf32, #tpu.memory_space<vmem>>, vector<1x8x16x32xf32>
    %1 = vector.shape_cast %0 : vector<1x8x16x32xf32> to vector<8x16x32xf32>
    %2 = vector.shape_cast %1 : vector<8x16x32xf32> to vector<128x32xf32>
    %cst = arith.constant dense<0.000000e+00> : vector<32xf32>
    %3 = vector.multi_reduction <add>, %2, %cst [0] : vector<128x32xf32> to vector<32xf32>
    %4 = vector.shape_cast %3 : vector<32xf32> to vector<1x32xf32>
    %5 = vector.shape_cast %4 : vector<1x32xf32> to vector<1x1x1x32xf32>
    %c0_3 = arith.constant 0 : index
    %c0_4 = arith.constant 0 : index
    %c0_5 = arith.constant 0 : index
    %c0_6 = arith.constant 0 : index
    %6 = vector.load %arg3[%c0_3, %c0_4, %c0_5, %c0_6] : memref<1x1x2x32xf32, #tpu.memory_space<vmem>>, vector<1x1x1x32xf32>
    tpu.vector_store %arg3[%c0_3, %c0_4, %c0_5, %c0_6], %5 {strides = array<i32>} : memref<1x1x2x32xf32, #tpu.memory_space<vmem>>, vector<1x1x1x32xf32>,
    %7 = arith.mulf %2, %2 : vector<128x32xf32>
    %cst_7 = arith.constant dense<0.000000e+00> : vector<32xf32>
    %8 = vector.multi_reduction <add>, %7, %cst_7 [0] : vector<128x32xf32> to vector<32xf32>
    %9 = vector.shape_cast %8 : vector<32xf32> to vector<1x32xf32>
    %10 = vector.shape_cast %9 : vector<1x32xf32> to vector<1x1x1x32xf32>
    %c0_8 = arith.constant 0 : index
    %c0_9 = arith.constant 0 : index
    %c1 = arith.constant 1 : index
    %c0_10 = arith.constant 0 : index
    %11 = vector.load %arg3[%c0_8, %c0_9, %c1, %c0_10] : memref<1x1x2x32xf32, #tpu.memory_space<vmem>>, vector<1x1x1x32xf32>
    tpu.vector_store %arg3[%c0_8, %c0_9, %c1, %c0_10], %10 {strides = array<i32>} : memref<1x1x2x32xf32, #tpu.memory_space<vmem>>, vector<1x1x1x32xf32>,
    return
  }
  func.func @transform_0(%arg0: i32, %arg1: i32) -> (i32, i32, i32, i32) {
    %c0_i32 = arith.constant 0 : i32
    %c0_i32_0 = arith.constant 0 : i32
    %c0_i32_1 = arith.constant 0 : i32
    return %arg0, %arg1, %c0_i32, %c0_i32_0 : i32, i32, i32, i32
  }
  func.func @transform_1(%arg0: i32, %arg1: i32) -> (i32, i32, i32, i32) {
    %c0_i32 = arith.constant 0 : i32
    %c0_i32_0 = arith.constant 0 : i32
    %c0_i32_1 = arith.constant 0 : i32
    return %arg0, %arg1, %c0_i32, %c0_i32_0 : i32, i32, i32, i32
  }
}

</mosaic_0001>

<bundles_post_ra>
// kernel: tpu_custom_call.1
= control target key start
LH: loop header
LB: loop body
LE: loop exit
PB: predicated region body
PF: predicated region fallthrough
CT: control target
= control target key end

     0   :  { %6 = vsyncpa [#allocation3], 0  ;;  %s855_s0 = inlined_call_operand.hbm [shape: f32[2,16,16,32], index: 0, kind: input, shape index: {}]   ;;  %s856_s1 = inlined_call_operand.hbm [shape: f32[2,2,2,32], index: 1, kind: output, shape index: {}]  }
   0x1   :  { %8 = vsyncpa [#allocation3 + $0x1], 0 }
   0x2   :  { %9 = vsyncpa [#allocation4], 0 }
   0x3   :  { %11 = vsyncpa [#allocation4 + $0x1], 0  ;;  %s609_s6 = smov 0   ;;  %s611_s7 = smov 0  }
   0x4   :  { %s613_s8 = smov 0   ;;  %s615_s9 = smov 0  }
   0x5   :  { %s617_s10 = smov 0   ;;  %s619_s11 = smov 0  }
   0x6   :  { %s621_s12 = smov 0   ;;  %s623_s13 = smov 0  }
   0x7 LB: > { %s367_s14 = sadd.s32 4294967295, %s593_s13   ;;  %s368_s15 = sadd.s32 4294967294, %s593_s13   ;;  %s593_s13 = sphi %s623_s13, %s17_s13   ;;  %s589_s12 = sphi %s621_s12, %s871_s12   ;;  %s585_s11 = sphi %s619_s11, %s870_s11   ;;  %s581_s10 = sphi %s617_s10, %s869_s10   ;;  %s577_s9 = sphi %s615_s9, %s868_s9   ;;  %s573_s8 = sphi %s613_s8, %s867_s8   ;;  %s569_s7 = sphi %s611_s7, %s866_s7   ;;  %s565_s6 = sphi %s609_s6, %s865_s6  }
   0x8   : > { %s26_s16 = sadd.s32 1, %s585_s11  ;;  %s29_s17 = sadd.s32 1, %s589_s12 }
   0x9   : > { %p27_p0 = scmp.ge.s32.totalorder %s26_s16, 2  ;;  %s38_s18 = sadd.s32 1, %s573_s8 }
   0xa   : > { %p45_p1 = scmp.ne.s32.totalorder %s573_s8, %s569_s7  ;;  %p46_p2 = scmp.eq.s32.totalorder %s593_s13, 0 }
   0xb   : > { %s873_s16 = smov (%p27_p0, %s26_s16), 0  ;;  %s875_s17 = smov (!%p27_p0, %s29_s17), %s589_s12 }
   0xc   : > { %s34_s19 = ssub.s32 %s585_s11, %s873_s16  ;;  %p662_p3 = por %p46_p2, %p45_p1 }
   0xd   : > { %p31_p4 = scmp.ge.s32.totalorder %s875_s17, 2  ;;  %p51_p5 = scmp.ne.s32.totalorder %s569_s7, %s565_s6 }
   0xe   : > { %p52_p6 = scmp.eq.s32.totalorder %s367_s14, 0  ;;  %p77_p7 = scmp.eq.s32.totalorder %s367_s14, 3 }
   0xf   : > { %s877_s17 = smov (%p31_p4, %s875_s17), 0  ;;  %p83_p10 = scmp.eq.s32.totalorder %s368_s15, 3 }
  0x10   : > { %p670_p8 = por %p52_p6, %p51_p5  ;;  %p674_p9 = por %p77_p7, %p45_p1 }
  0x11   : > { %s33_s23 = ssub.s32 %s589_s12, %s877_s17  ;;  %p680_p12 = por %p83_p10, %p51_p5 }
  0x12   : > { %s860_s22 = scalar_select %p674_p9, 1, 0 }
  0x13   : > { %s35_s24 = sor.u32 %s34_s19, %s33_s23  ;;  %p397_p13 = scmp.lt.s32.totalorder %s593_s13, 4 }
  0x14   : > { %p36_p11 = scmp.eq.s32.totalorder %s35_s24, 0  ;;  %s103_s26 = sand.u32 1, %s573_s8  }
  0x15   : > { %s861_s25 = scalar_select %p680_p12, 1, 0 }
  0x16   : > { %s687_s27 = scalar_select %p36_p11, %s573_s8, %s38_s18  }
  0x17   : > { %s371_s28 = sshll.u32 %s103_s26, 7  ;;  %s384_s29 = sshll.u32 %s585_s11, 4 }
  0x18   : > { %s374_s30 = sshll.u32 %s589_s12, 5  ;;  %s107_s2 = scalar_lea.vmem [#allocation2], %s371_s28 }
  0x19   : > { %s117_s3 = sshll.u32 %s107_s2, 4  ;;  %s114_s4 = sadd.s32 %s384_s29, %s374_s30  ;;  %s691_s3 = int_to_ptr.vmem [resolvable:$true] %s117_s3 }
  0x1a   : > { %s375_s5 = sshll.u32 %s114_s4, 7  ;;  %p695_p0 = pnand %p397_p13, %p662_p3 }
  0x1b   : > { %s702_s18 = scalar_lea.hbm %s855_s0, %s375_s5  ;;  %s704_s23 = scalar_lea.sflag [#allocation3], %s103_s26 }
  0x1c   : > { %s465_s24 = scalar_lea.hbm %s702_s18, 2048  ;;  %p467_p2 = pneg %p695_p0 }
  0x1d   : > { %p466_p1 = scmp.ne.s32.totalorder %s702_s18, %s465_s24  ;;  %s470_s29 = scalar_lea.hbm %s855_s0, 8192 }
  0x1e   : > { %p471_p5 = scmp.lt.u32.totalorder %s702_s18, %s855_s0  ;;  %p472_p6 = scmp.lt.u32.totalorder %s470_s29, %s465_s24 }
  0x1f   : > { %p468_p3 = pnand %p467_p2, %p466_p1  ;;  %p474_p10 = scmp.lt.u32.totalorder %s465_s24, %s702_s18 }
  0x20   : > { %p473_p7 = por %p472_p6, %p471_p5 }
  0x21   : > { %p469_p4 = pneg %p468_p3 }
  0x22   : > { %p475_p11 = por %p474_p10, %p473_p7 }
  0x24   : > { %p476_p13 = pnand %p475_p11, %p469_p4 }
  0x26   : > { %479 = shalt.err (!%p476_p13)
}
  0x27   : > { %s480_s26 = scalar_lea.vmem %s691_s3, 2048  ;;  %s595_s4 = smov [#allocation2]  }
  0x28   : > { %p481_p1 = scmp.ne.s32.totalorder %s691_s3, %s480_s26  ;;  %s485_s5 = sshll.u32 %s595_s4, 4  ;;  %s486_s5 = int_to_ptr.vmem [resolvable:$false] %s485_s5 }
  0x29   : > { %s487_s15 = scalar_lea.vmem %s486_s5, 4096  ;;  %p488_p9 = scmp.lt.s32.totalorder %s691_s3, %s486_s5 }
  0x2a   : > { %p483_p3 = pnand %p481_p1, %p467_p2  ;;  %p489_p5 = scmp.lt.s32.totalorder %s487_s15, %s480_s26 }
  0x2c   : > { %p484_p12 = pneg %p483_p3  ;;  %p490_p6 = por %p489_p5, %p488_p9 }
  0x2e   : > { %p491_p7 = pnand %p490_p6, %p484_p12 }
  0x30   : > { %494 = shalt.err (!%p491_p7)
}
  0x31   : > { %s596_s19 = smov 128   ;;  %s597_s24 = smov 8  }
  0x32   : > { %392 = dma.hbm_to_vmem [thread:$0]  (!%p695_p0), %s702_s18, 2048, %s691_s3, %s704_s23, %s596_s19, %s596_s19, %s597_s24  }
  0x33   : > { %p376_p2 = scmp.ge.s32.totalorder %s593_s13, 1  ;;  %p125_p4 = scmp.lt.s32.totalorder %s593_s13, 5 }
  0x35   : > { %p126_p10 = pnand %p376_p2, %p125_p4 }
  0x36   : > { %s735_s20 = sand.u32 (!%p126_p10), 1, %s569_s7  }
  0x37   : > { %129 = sbr.rel (%p126_p10) target bundleno = 124 (0x7c), region = 24  ;;  %s377_s28 = sshll.u32 (!%p126_p10), %s735_s20, 7 }
  0x38   : > { %s132_s29 = scalar_lea.sflag (!%p126_p10), [#allocation3], %s735_s20  ;;  %s739_s30 = scalar_lea.vmem (!%p126_p10), [#allocation2], %s377_s28 }
  0x3e   : > { %556 = dma.done.wait (%p670_p8), %s132_s29, 2048  }
  0x3f   : > { %558 = vsyncadd (%p670_p8), %s132_s29, 4294965248  ;;  %vm171_vm0 = vcmask 261120   ;;  %v155_v0 = vld [vmem:[%s739_s30] sm:$0xff]  ;;  %v156_v1 = vld [vmem:[%s739_s30 + $0x8] sm:$0xff]  ;;  %s378_s21 = sshll.u32 %s735_s20, 1  ;;  %vm209_vm1 = vcmask 253952  }
  0x40   : > { %v157_v2 = vld [vmem:[%s739_s30 + $0x10] sm:$0xff]  ;;  %v172_v3 = vsel %vm171_vm0, %v155_v0, 0.0  ;;  %v173_v4 = vsel %vm171_vm0, %v156_v1, 0.0  ;;  %v158_v6 = vld [vmem:[%s739_s30 + $0x18] sm:$0xff]  ;;  %v159_v9 = vld [vmem:[%s739_s30 + $0x20] sm:$0xff]  ;;  %v211_v14 = vmul.f32 %v155_v0, %v155_v0  ;;  %v212_v15 = vmul.f32 %v156_v1, %v156_v1  ;;  %s380_s3 = sshll.u32 %s581_s10, 1 }
  0x41   : > { %v175_v5 = vsel %vm171_vm0, %v157_v2, 0.0  ;;  %v174_v7 = vadd.f32 %v173_v4, %v172_v3  ;;  %v177_v8 = vsel %vm171_vm0, %v158_v6, 0.0  ;;  %v179_v11 = vsel %vm171_vm0, %v159_v9, 0.0  ;;  %v160_v12 = vld [vmem:[%s739_s30 + $0x28] sm:$0xff]  ;;  %v161_v18 = vld [vmem:[%s739_s30 + $0x30] sm:$0xff]  ;;  %v162_v23 = vld [vmem:[%s739_s30 + $0x38] sm:$0xff]  ;;  %s277_s18 = sadd.s32 %s577_s9, %s380_s3 }
  0x42   : > { %v213_v16 = vmul.f32 %v157_v2, %v157_v2  ;;  %v181_v17 = vsel %vm171_vm0, %v160_v12, 0.0  ;;  %v214_v20 = vmul.f32 %v158_v6, %v158_v6  ;;  %v183_v21 = vsel %vm171_vm0, %v161_v18, 0.0  ;;  %v163_v30 = vld [vmem:[%s739_s30 + $0x40] sm:$0xff]  ;;  %v164_v36 = vld [vmem:[%s739_s30 + $0x48] sm:$0xff]  ;;  %v165_v42 = vld [vmem:[%s739_s30 + $0x50] sm:$0xff]  ;;  %s153_s14 = scalar_lea.vmem [#allocation5], %s378_s21 }
  0x43   : > { %v176_v10 = vadd.f32 %v175_v5, %v174_v7  ;;  %v215_v22 = vmul.f32 %v159_v9, %v159_v9  ;;  %v227_v25 = vsel %vm171_vm0, %v211_v14, 0.0  ;;  %v228_v26 = vsel %vm171_vm0, %v212_v15, 0.0  ;;  %v166_v48 = vld [vmem:[%s739_s30 + $0x58] sm:$0xff]  ;;  %v167_v54 = vld [vmem:[%s739_s30 + $0x60] sm:$0xff]  ;;  %v168_v60 = vld [vmem:[%s739_s30 + $0x68] sm:$0xff]  ;;  %s281_s23 = sshll.u32 %s153_s14, 4  ;;  %s797_s23 = int_to_ptr.vmem [resolvable:$true] %s281_s23 }
  0x44   : > { %v230_v27 = vsel %vm171_vm0, %v213_v16, 0.0  ;;  %v185_v28 = vsel %vm171_vm0, %v162_v23, 0.0  ;;  %v229_v29 = vadd.f32 %v228_v26, %v227_v25  ;;  %v216_v32 = vmul.f32 %v160_v12, %v160_v12  ;;  %v169_v2 = vld [vmem:[%s739_s30 + $0x70] sm:$0xff]  ;;  %s381_s2 = sshll.u32 %s277_s18, 5  ;;  %s266_s5 = scalar_lea.sflag [#allocation4], %s735_s20 }
  0x45   : > { %v178_v13 = vadd.f32 %v177_v8, %v176_v10  ;;  %v232_v33 = vsel %vm171_vm0, %v214_v20, 0.0  ;;  %v187_v34 = vsel %vm171_vm0, %v163_v30, 0.0  ;;  %v217_v38 = vmul.f32 %v161_v18, %v161_v18  ;;  %v170_v8 = vld [vmem:[%s739_s30 + $0x78] sm:$0xff]  ;;  %s802_s10 = scalar_lea.hbm %s856_s1, %s381_s2  ;;  %s495_s15 = scalar_lea.vmem %s797_s23, 32 }
  0x46   : > { %v231_v35 = vadd.f32 %v230_v27, %v229_v29  ;;  %v234_v39 = vsel %vm171_vm0, %v215_v22, 0.0  ;;  %v189_v40 = vsel %vm171_vm0, %v164_v36, 0.0  ;;  %v218_v44 = vmul.f32 %v162_v23, %v162_v23  ;;  %p496_p8 = scmp.ne.s32.totalorder %s797_s23, %s495_s15  ;;  %p863_p9 = scmp.ne.s32.totalorder %s860_s22, 0 }
  0x47   : > { %v180_v19 = vadd.f32 %v179_v11, %v178_v13  ;;  %v236_v45 = vsel %vm171_vm0, %v216_v32, 0.0  ;;  %v191_v46 = vsel %vm171_vm0, %v165_v42, 0.0  ;;  %v219_v50 = vmul.f32 %v163_v30, %v163_v30  ;;  %s598_s9 = smov [#allocation5]  }
  0x48   : > { %v233_v41 = vadd.f32 %v232_v33, %v231_v35  ;;  %v238_v51 = vsel %vm171_vm0, %v217_v38, 0.0  ;;  %v193_v52 = vsel %vm171_vm0, %v166_v48, 0.0  ;;  %v220_v56 = vmul.f32 %v164_v36, %v164_v36  ;;  %p497_p12 = pnand %p496_p8, %p863_p9  ;;  %s499_s19 = sshll.u32 %s598_s9, 4  ;;  %s500_s19 = int_to_ptr.vmem [resolvable:$false] %s499_s19 }
  0x49   : > { %v182_v24 = vadd.f32 %v181_v17, %v180_v19  ;;  %v240_v57 = vsel %vm171_vm0, %v218_v44, 0.0  ;;  %v195_v58 = vsel %vm171_vm0, %v167_v54, 0.0  ;;  %v221_v62 = vmul.f32 %v165_v42, %v165_v42  ;;  %s501_s24 = scalar_lea.vmem %s500_s19, 64  ;;  %p502_p11 = scmp.lt.s32.totalorder %s797_s23, %s500_s19 }
  0x4a   : > { %v235_v47 = vadd.f32 %v234_v39, %v233_v41  ;;  %v242_v63 = vsel %vm171_vm0, %v219_v50, 0.0  ;;  %v197_v0 = vsel %vm171_vm0, %v168_v60, 0.0  ;;  %v222_v4 = vmul.f32 %v166_v48, %v166_v48  ;;  %p498_p0 = pneg %p497_p12  ;;  %p503_p13 = scmp.lt.s32.totalorder %s501_s24, %s495_s15 }
  0x4b   : > { %v184_v31 = vadd.f32 %v183_v21, %v182_v24  ;;  %v244_v5 = vsel %vm171_vm0, %v220_v56, 0.0  ;;  %v199_v6 = vsel %vm171_vm0, %v169_v2, 0.0  ;;  %v223_v10 = vmul.f32 %v167_v54, %v167_v54 }
  0x4c   : > { %v237_v53 = vadd.f32 %v236_v45, %v235_v47  ;;  %v246_v11 = vsel %vm171_vm0, %v221_v62, 0.0  ;;  %v201_v12 = vsel %vm171_vm0, %v170_v8, 0.0  ;;  %v224_v15 = vmul.f32 %v168_v60, %v168_v60  ;;  %p504_p1 = por %p503_p13, %p502_p11 }
  0x4d   : > { %v186_v37 = vadd.f32 %v185_v28, %v184_v31  ;;  %v248_v16 = vsel %vm171_vm0, %v222_v4, 0.0  ;;  %v225_v19 = vmul.f32 %v169_v2, %v169_v2  ;;  %v250_v20 = vsel %vm171_vm0, %v223_v10, 0.0 }
  0x4e   : > { %v239_v59 = vadd.f32 %v238_v51, %v237_v53  ;;  %v226_v23 = vmul.f32 %v170_v8, %v170_v8  ;;  %v252_v24 = vsel %vm171_vm0, %v224_v15, 0.0  ;;  %p505_p3 = pnand %p504_p1, %p498_p0 }
  0x4f   : > { %v188_v43 = vadd.f32 %v187_v34, %v186_v37  ;;  %v254_v27 = vsel %vm171_vm0, %v225_v19, 0.0 }
  0x50   : > { %v241_v1 = vadd.f32 %v240_v57, %v239_v59  ;;  %v256_v30 = vsel %vm171_vm0, %v226_v23, 0.0 }
  0x51   : > { %v190_v49 = vadd.f32 %v189_v40, %v188_v43 }
  0x52   : > { %v243_v7 = vadd.f32 %v242_v63, %v241_v1 }
  0x53   : > { %v192_v55 = vadd.f32 %v191_v46, %v190_v49 }
  0x54   : > { %v245_v13 = vadd.f32 %v244_v5, %v243_v7 }
  0x55   : > { %v194_v61 = vadd.f32 %v193_v52, %v192_v55 }
  0x56   : > { %v247_v17 = vadd.f32 %v246_v11, %v245_v13 }
  0x57   : > { %v196_v3 = vadd.f32 %v195_v58, %v194_v61 }
  0x58   : > { %v249_v21 = vadd.f32 %v248_v16, %v247_v17 }
  0x59   : > { %v198_v9 = vadd.f32 %v197_v0, %v196_v3 }
  0x5a   : > { %v251_v25 = vadd.f32 %v250_v20, %v249_v21 }
  0x5b   : > { %v200_v14 = vadd.f32 %v199_v6, %v198_v9 }
  0x5c   : > { %v253_v28 = vadd.f32 %v252_v24, %v251_v25 }
  0x5d   : > { %v202_v18 = vadd.f32 %v201_v12, %v200_v14 }
  0x5e   : > { %v255_v31 = vadd.f32 %v254_v27, %v253_v28 }
  0x5f   : > { %v203_v22 = vrot.slane %v202_v18, 4 }
  0x60   : > { %v257_v33 = vadd.f32 %v256_v30, %v255_v31 }
  0x61   : > { %v204_v26 = vadd.f32 %v203_v22, %v202_v18 }
  0x62   : > { %v258_v35 = vrot.slane %v257_v33, 4 }
  0x63   : > { %v205_v29 = vrot.slane %v204_v26, 2 }
  0x64   : > { %v259_v37 = vadd.f32 %v258_v35, %v257_v33 }
  0x65   : > { %v206_v32 = vadd.f32 %v205_v29, %v204_v26 }
  0x66   : > { %v260_v38 = vrot.slane %v259_v37, 2 }
  0x67   : > { %v207_v34 = vrot.slane %v206_v32, 1 }
  0x68   : > { %v261_v39 = vadd.f32 %v260_v38, %v259_v37 }
  0x69   : > { %v208_v36 = vadd.f32 %v207_v34, %v206_v32 }
  0x6a   : > { %v262_v40 = vrot.slane %v261_v39, 1 }
  0x6b   : > { %210 = vst.msk [vmem:[%s153_s14] sm:$0x1] %vm209_vm1, %v208_v36 }
  0x6c   : > { %v263_v41 = vadd.f32 %v262_v40, %v261_v39 }
  0x6e   : > { %264 = vst.msk [vmem:[%s153_s14 + $0x1] sm:$0x1] %vm209_vm1, %v263_v41 }
  0x6f   : > { %508 = shalt.err (!%p505_p3)
}
  0x70   : > { %s509_s20 = scalar_lea.hbm %s802_s10, 32  ;;  %s513_s30 = scalar_lea.hbm %s856_s1, 128 }
  0x71   : > { %p510_p5 = scmp.ne.s32.totalorder %s802_s10, %s509_s20  ;;  %p514_p2 = scmp.lt.u32.totalorder %s802_s10, %s856_s1 }
  0x72   : > { %p515_p4 = scmp.lt.u32.totalorder %s513_s30, %s509_s20  ;;  %p517_p8 = scmp.lt.u32.totalorder %s509_s20, %s802_s10 }
  0x73   : > { %p511_p6 = pnand %p510_p5, %p863_p9 }
  0x74   : > { %p516_p10 = por %p515_p4, %p514_p2 }
  0x75   : > { %p512_p7 = pneg %p511_p6 }
  0x76   : > { %p518_p12 = por %p517_p8, %p516_p10 }
  0x78   : > { %p519_p0 = pnand %p518_p12, %p512_p7 }
  0x7a   : > { %522 = shalt.err (!%p519_p0)
}
  0x7b   : > { %387 = dma.vmem_to_hbm [thread:$0]  (%p863_p9), %s797_s23, 32, %s802_s10, %s266_s5  }
  0x7c PF: > { %p398_p11 = scmp.ge.s32.totalorder %s593_s13, 2  ;;  %s293_s14 = sand.u32 1, %s565_s6  }
  0x7d   : > { %p864_p13 = scmp.ne.s32.totalorder %s861_s25, 0  ;;  %s294_s18 = scalar_lea.sflag [#allocation4], %s293_s14 }
  0x7f   : > { %p394_p1 = pnand %p398_p11, %p864_p13 }
  0x81   : > { %560 = dma.done.wait (!%p394_p1), %s294_s18, 32  }
  0x82   : > { %562 = vsyncadd (!%p394_p1), %s294_s18, 4294967264  ;;  %s17_s13 = sadd.s32 1, %s593_s13   ;;  %s865_s6 = smov %s569_s7 }
  0x83   : > { %p14_p3 = scmp.ge.s32.totalorder %s17_s13, 6   ;;  %s866_s7 = smov %s573_s8 }
  0x84   : > { %s867_s8 = smov %s687_s27  ;;  %s868_s9 = smov %s585_s11 }
  0x85   : > { %s869_s10 = smov %s589_s12  ;;  %s870_s11 = smov %s873_s16 }
  0x86   : > { %s871_s12 = smov %s877_s17  ;;  %16 = sbr.rel (!%p14_p3) target bundleno = 7 (0x7), region = 69 }
  0x8d   :  { %299 = vsyncpa [#allocation3], 1 }
  0x8e   :  { %301 = vsyncpa [#allocation3 + $0x1], 1 }
  0x8f   :  { %302 = vsyncpa [#allocation4], 1 }
  0x90   :  { %304 = vsyncpa [#allocation4 + $0x1], 1 }

</bundles_post_ra>
